<compile_context>
chip_gen: v5e
topology: v5e:2x2
jax: 0.10.0
libtpu: 0.0.40
codegen_flags: <defaults>
</compile_context>

<pallas_src>
import functools

import jax
import jax.numpy as jnp
from jax.experimental import pallas as pl
from jax.experimental.pallas import tpu as pltpu


def _round_up(x, m):
    return (x + m - 1) // m * m


def _se_kernel(x_ref, w1_ref, b1_ref, w2_ref, b2_ref, o_ref, acc_ref, *, inv_hw):
    # x_ref : (1, C, HW_tile)  streamed spatial tile of one batch row
    # w1_ref: (C, Ch)   b1_ref: (1, Ch)   w2_ref: (Ch, C)   b2_ref: (1, C)
    # o_ref : (1, 1, C) sigmoid gate for this batch row
    # acc_ref: (1, C) f32 persistent partial-sum accumulator (VMEM scratch)
    hw_step = pl.program_id(1)

    @pl.when(hw_step == 0)
    def _init():
        acc_ref[...] = jnp.zeros_like(acc_ref)

    # Hot path: one XLU lane-reduce + one VPU add per tile; the x DMA is the
    # binding slot (memory-bound), so nothing else lives in this path.
    acc_ref[...] += jnp.sum(x_ref[...], axis=-1, dtype=jnp.float32)

    @pl.when(hw_step == pl.num_programs(1) - 1)
    def _finalize():
        # mean = sum * (1/HW), with 1/HW precomputed statically on the host.
        s = acc_ref[...] * inv_hw                                   # (1, C)
        h = jnp.dot(s, w1_ref[...].astype(jnp.float32),
                    preferred_element_type=jnp.float32)
        h = jnp.maximum(h + b1_ref[...].astype(jnp.float32), 0.0)   # ReLU
        z = jnp.dot(h, w2_ref[...].astype(jnp.float32),
                    preferred_element_type=jnp.float32)
        z = z + b2_ref[...].astype(jnp.float32)
        # sigmoid: exp on the EUP; exact reciprocal keeps bitwise-tight accuracy
        # (approx=True is fine if a ~1e-3 tolerance is acceptable downstream).
        gate = pl.reciprocal(1.0 + jnp.exp(-z), approx=False)       # (1, C)
        o_ref[0] = gate.astype(o_ref.dtype)


def se_block(x, w1, b1, w2, b2, *, hw_tile_budget_bytes=4 * 1024 * 1024):
    """x: (B, C, H, W) NCHW.  Returns (B, C, 1, 1) sigmoid gate (SEBlock.forward)."""
    B, C, H, W = x.shape
    Ch = w1.shape[1]
    HW = H * W
    itemsize = jnp.dtype(x.dtype).itemsize

    # Lane-dense spatial tile: multiple of 128, capped so a double-buffered x
    # tile stays well inside every generation's scoped VMEM (v5e/v6e/v7x).
    max_lanes = max(128, (hw_tile_budget_bytes // (C * itemsize)) // 128 * 128)
    hw_tile = min(_round_up(HW, 128), max_lanes)
    hw_pad = _round_up(HW, hw_tile)
    num_hw = hw_pad // hw_tile

    x3 = x.reshape(B, C, HW)
    if hw_pad != HW:
        # Zero padding is exact for a sum; we divide by the true HW at finalize.
        x3 = jnp.pad(x3, ((0, 0), (0, 0), (0, hw_pad - HW)))

    b1_2d = b1.reshape(1, Ch)
    b2_2d = b2.reshape(1, C)

    kernel = functools.partial(_se_kernel, inv_hw=float(1.0 / HW))

    cost = pl.CostEstimate(
        flops=B * C * hw_pad + 4 * B * C * Ch,          # pool adds + 2 tiny matmuls
        transcendentals=B * C,                          # exp in the sigmoid
        bytes_accessed=(B * C * hw_pad * itemsize       # streaming x dominates
                        + (w1.size + b1.size + w2.size + b2.size)
                        * jnp.dtype(w1.dtype).itemsize
                        + B * C * itemsize),
    )

    gate = pl.pallas_call(
        kernel,
        out_shape=jax.ShapeDtypeStruct((B, 1, C), x.dtype),
        grid_spec=pltpu.PrefetchScalarGridSpec(
            num_scalar_prefetch=0,
            grid=(B, num_hw),                            # reduction axis last
            in_specs=[
                pl.BlockSpec((1, C, hw_tile), lambda b, h: (b, 0, h)),
                # constant index maps: weights/biases DMA'd once, never re-fetched
                pl.BlockSpec((C, Ch), lambda b, h: (0, 0)),
                pl.BlockSpec((1, Ch), lambda b, h: (0, 0)),
                pl.BlockSpec((Ch, C), lambda b, h: (0, 0)),
                pl.BlockSpec((1, C), lambda b, h: (0, 0)),
            ],
            out_specs=pl.BlockSpec((1, 1, C), lambda b, h: (b, 0, 0)),
            scratch_shapes=[pltpu.VMEM((1, C), jnp.float32)],
        ),
        compiler_params=pltpu.CompilerParams(
            dimension_semantics=("parallel", "arbitrary"),
            vmem_limit_bytes=32 * 1024 * 1024,
        ),
        cost_estimate=cost,
    )(x3, w1, b1_2d, w2, b2_2d)

    return gate.reshape(B, C, 1, 1)


if __name__ == "__main__":
    B, C, H, W = 2, 64, 16, 16
    r = 16
    Ch = C // r  # hidden width of the excitation MLP

    key = jax.random.PRNGKey(0)
    kx, k1, k2, k3, k4 = jax.random.split(key, 5)

    x = jax.random.normal(kx, (B, C, H, W), dtype=jnp.float32)

    # PyTorch Linear is y = x @ W.T + b; weights stored pre-transposed as (in, out).
    w1 = jax.random.normal(k1, (C, Ch), dtype=jnp.float32) * (1.0 / jnp.sqrt(C))
    b1 = jax.random.normal(k2, (Ch,), dtype=jnp.float32) * 0.1
    w2 = jax.random.normal(k3, (Ch, C), dtype=jnp.float32) * (1.0 / jnp.sqrt(Ch))
    b2 = jax.random.normal(k4, (C,), dtype=jnp.float32) * 0.1

    out = se_block(x, w1, b1, w2, b2)
    jax.block_until_ready(out)

    # Pure-JAX reference of the same forward pass.
    s_ref = jnp.mean(x, axis=(2, 3))
    h_ref = jnp.maximum(s_ref @ w1 + b1, 0.0)
    e_ref = jax.nn.sigmoid(h_ref @ w2 + b2).reshape(B, C, 1, 1)
    assert out.shape == (B, C, 1, 1)
    assert jnp.allclose(out, e_ref, atol=1e-5, rtol=1e-5), \
        float(jnp.max(jnp.abs(out - e_ref)))

    print("KERNEL_OK")
</pallas_src>

<mosaic_0001>
module attributes {stable_mosaic.version = 11 : i64} {
  func.func @_se_kernel(%arg0: i32, %arg1: i32, %arg2: memref<1x64x256xf32, #tpu.memory_space<vmem>>, %arg3: memref<64x4xf32, #tpu.memory_space<vmem>>, %arg4: memref<1x4xf32, #tpu.memory_space<vmem>>, %arg5: memref<4x64xf32, #tpu.memory_space<vmem>>, %arg6: memref<1x64xf32, #tpu.memory_space<vmem>>, %arg7: memref<1x1x64xf32, #tpu.memory_space<vmem>>, %arg8: memref<1x64xf32, #tpu.memory_space<vmem>>) attributes {dimension_semantics = [#tpu.dimension_semantics<parallel>, #tpu.dimension_semantics<arbitrary>], iteration_bounds = array<i64: 2, 1>, scalar_prefetch = 0 : i64, scratch_operands = 1 : i64, tpu.core_type = #tpu.core_type<tc>, window_params = [{transform_indices = @transform_0, window_bounds = array<i64: 1, 64, 256>}, {pipeline_mode = #tpu.pipeline_mode<synchronous>, transform_indices = @transform_1, window_bounds = array<i64: 64, 4>}, {pipeline_mode = #tpu.pipeline_mode<synchronous>, transform_indices = @transform_2, window_bounds = array<i64: 1, 4>}, {pipeline_mode = #tpu.pipeline_mode<synchronous>, transform_indices = @transform_3, window_bounds = array<i64: 4, 64>}, {pipeline_mode = #tpu.pipeline_mode<synchronous>, transform_indices = @transform_4, window_bounds = array<i64: 1, 64>}, {transform_indices = @transform_5, window_bounds = array<i64: 1, 1, 64>}]} {
    %c0_i32 = arith.constant 0 : i32
    %0 = arith.cmpi eq, %arg1, %c0_i32 : i32
    %1 = arith.extui %0 : i1 to i32
    %c0_i32_0 = arith.constant 0 : i32
    %2 = arith.cmpi ne, %1, %c0_i32_0 : i32
    scf.if %2 {
      %cst_9 = arith.constant 0.000000e+00 : f32
      %11 = vector.broadcast %cst_9 : f32 to vector<1x64xf32>
      %c0_10 = arith.constant 0 : index
      %c0_11 = arith.constant 0 : index
      %12 = vector.load %arg8[%c0_10, %c0_11] : memref<1x64xf32, #tpu.memory_space<vmem>>, vector<1x64xf32>
      tpu.vector_store %arg8[%c0_10, %c0_11], %11 {strides = array<i32>} : memref<1x64xf32, #tpu.memory_space<vmem>>, vector<1x64xf32>,
    } else {
    }
    %c0 = arith.constant 0 : index
    %c0_1 = arith.constant 0 : index
    %3 = vector.load %arg8[%c0, %c0_1] : memref<1x64xf32, #tpu.memory_space<vmem>>, vector<1x64xf32>
    %c0_2 = arith.constant 0 : index
    %c0_3 = arith.constant 0 : index
    %c0_4 = arith.constant 0 : index
    %4 = vector.load %arg2[%c0_2, %c0_3, %c0_4] : memref<1x64x256xf32, #tpu.memory_space<vmem>>, vector<1x64x256xf32>
    %cst = arith.constant dense<0.000000e+00> : vector<1x64xf32>
    %5 = vector.multi_reduction <add>, %4, %cst [2] : vector<1x64x256xf32> to vector<1x64xf32>
    %6 = arith.addf %3, %5 : vector<1x64xf32>
    %c0_5 = arith.constant 0 : index
    %c0_6 = arith.constant 0 : index
    %7 = vector.load %arg8[%c0_5, %c0_6] : memref<1x64xf32, #tpu.memory_space<vmem>>, vector<1x64xf32>
    tpu.vector_store %arg8[%c0_5, %c0_6], %6 {strides = array<i32>} : memref<1x64xf32, #tpu.memory_space<vmem>>, vector<1x64xf32>,
    %c0_i32_7 = arith.constant 0 : i32
    %8 = arith.cmpi eq, %arg1, %c0_i32_7 : i32
    %9 = arith.extui %8 : i1 to i32
    %c0_i32_8 = arith.constant 0 : i32
    %10 = arith.cmpi ne, %9, %c0_i32_8 : i32
    scf.if %10 {
      %c0_9 = arith.constant 0 : index
      %c0_10 = arith.constant 0 : index
      %11 = vector.load %arg8[%c0_9, %c0_10] : memref<1x64xf32, #tpu.memory_space<vmem>>, vector<1x64xf32>
      %cst_11 = arith.constant 3.906250e-03 : f32
      %12 = vector.broadcast %cst_11 : f32 to vector<1x64xf32>
      %13 = arith.mulf %11, %12 : vector<1x64xf32>
      %c0_12 = arith.constant 0 : index
      %c0_13 = arith.constant 0 : index
      %14 = vector.load %arg3[%c0_12, %c0_13] : memref<64x4xf32, #tpu.memory_space<vmem>>, vector<64x4xf32>
      %cst_14 = arith.constant dense<0.000000e+00> : vector<1x4xf32>
      %15 = tpu.matmul %13, %14, %cst_14 {dimension_numbers = #tpu.dot_dimension_numbers<[1], [0], [0], [1], [0, 0, 1, 1], [], []>} : vector<1x64xf32>, vector<64x4xf32>, vector<1x4xf32> -> vector<1x4xf32>
      %c0_15 = arith.constant 0 : index
      %c0_16 = arith.constant 0 : index
      %16 = vector.load %arg4[%c0_15, %c0_16] : memref<1x4xf32, #tpu.memory_space<vmem>>, vector<1x4xf32>
      %17 = arith.addf %15, %16 : vector<1x4xf32>
      %cst_17 = arith.constant 0.000000e+00 : f32
      %18 = vector.broadcast %cst_17 : f32 to vector<1x4xf32>
      %19 = arith.maximumf %17, %18 : vector<1x4xf32>
      %c0_18 = arith.constant 0 : index
      %c0_19 = arith.constant 0 : index
      %20 = vector.load %arg5[%c0_18, %c0_19] : memref<4x64xf32, #tpu.memory_space<vmem>>, vector<4x64xf32>
      %cst_20 = arith.constant dense<0.000000e+00> : vector<1x64xf32>
      %21 = tpu.matmul %19, %20, %cst_20 {dimension_numbers = #tpu.dot_dimension_numbers<[1], [0], [0], [1], [0, 0, 1, 1], [], []>} : vector<1x4xf32>, vector<4x64xf32>, vector<1x64xf32> -> vector<1x64xf32>
      %c0_21 = arith.constant 0 : index
      %c0_22 = arith.constant 0 : index
      %22 = vector.load %arg6[%c0_21, %c0_22] : memref<1x64xf32, #tpu.memory_space<vmem>>, vector<1x64xf32>
      %23 = arith.addf %21, %22 : vector<1x64xf32>
      %cst_23 = arith.constant 0.000000e+00 : f32
      %24 = vector.broadcast %cst_23 : f32 to vector<1x64xf32>
      %25 = arith.subf %24, %23 : vector<1x64xf32>
      %26 = math.exp %25 : vector<1x64xf32>
      %cst_24 = arith.constant 1.000000e+00 : f32
      %27 = vector.broadcast %cst_24 : f32 to vector<1x64xf32>
      %28 = arith.addf %27, %26 : vector<1x64xf32>
      %29 = tpu.reciprocal %28 : vector<1x64xf32> -> vector<1x64xf32>
      %c0_25 = arith.constant 0 : index
      %c0_26 = arith.constant 0 : index
      %c0_27 = arith.constant 0 : index
      %30 = vector.load %arg7[%c0_25, %c0_26, %c0_27] : memref<1x1x64xf32, #tpu.memory_space<vmem>>, vector<1x1x64xf32>
      %31 = vector.shape_cast %30 : vector<1x1x64xf32> to vector<1x64xf32>
      %32 = vector.shape_cast %29 : vector<1x64xf32> to vector<1x1x64xf32>
      tpu.vector_store %arg7[%c0_25, %c0_26, %c0_27], %32 {strides = array<i32>} : memref<1x1x64xf32, #tpu.memory_space<vmem>>, vector<1x1x64xf32>,
    } else {
    }
    return
  }
  func.func @transform_0(%arg0: i32, %arg1: i32) -> (i32, i32, i32) {
    %c0_i32 = arith.constant 0 : i32
    %c0_i32_0 = arith.constant 0 : i32
    return %arg0, %c0_i32, %arg1 : i32, i32, i32
  }
  func.func @transform_1(%arg0: i32, %arg1: i32) -> (i32, i32) {
    %c0_i32 = arith.constant 0 : i32
    %c0_i32_0 = arith.constant 0 : i32
    %c0_i32_1 = arith.constant 0 : i32
    return %c0_i32, %c0_i32_0 : i32, i32
  }
  func.func @transform_2(%arg0: i32, %arg1: i32) -> (i32, i32) {
    %c0_i32 = arith.constant 0 : i32
    %c0_i32_0 = arith.constant 0 : i32
    %c0_i32_1 = arith.constant 0 : i32
    return %c0_i32, %c0_i32_0 : i32, i32
  }
  func.func @transform_3(%arg0: i32, %arg1: i32) -> (i32, i32) {
    %c0_i32 = arith.constant 0 : i32
    %c0_i32_0 = arith.constant 0 : i32
    %c0_i32_1 = arith.constant 0 : i32
    return %c0_i32, %c0_i32_0 : i32, i32
  }
  func.func @transform_4(%arg0: i32, %arg1: i32) -> (i32, i32) {
    %c0_i32 = arith.constant 0 : i32
    %c0_i32_0 = arith.constant 0 : i32
    %c0_i32_1 = arith.constant 0 : i32
    return %c0_i32, %c0_i32_0 : i32, i32
  }
  func.func @transform_5(%arg0: i32, %arg1: i32) -> (i32, i32, i32) {
    %c0_i32 = arith.constant 0 : i32
    %c0_i32_0 = arith.constant 0 : i32
    %c0_i32_1 = arith.constant 0 : i32
    return %arg0, %c0_i32, %c0_i32_0 : i32, i32, i32
  }
}

</mosaic_0001>

<bundles_post_ra>
// kernel: tpu_custom_call.1
= control target key start
LH: loop header
LB: loop body
LE: loop exit
PB: predicated region body
PF: predicated region fallthrough
CT: control target
= control target key end

     0   :  { %10 = vsyncpa [#allocation4], 0  ;;  %s1089_s0 = inlined_call_operand.hbm [shape: f32[2,64,256], index: 0, kind: input, shape index: {}]   ;;  %s1090_s1 = inlined_call_operand.vmem [shape: f32[64,4], index: 1, kind: input, shape index: {}]   ;;  %s1091_s2 = inlined_call_operand.vmem [shape: f32[1,4], index: 2, kind: input, shape index: {}]   ;;  %s1092_s3 = inlined_call_operand.vmem [shape: f32[4,64], index: 3, kind: input, shape index: {}]   ;;  %s1093_s4 = inlined_call_operand.vmem [shape: f32[1,64], index: 4, kind: input, shape index: {}]   ;;  %s1094_s5 = inlined_call_operand.hbm [shape: f32[2,1,64], index: 5, kind: output, shape index: {}]  }
   0x1   :  { %12 = vsyncpa [#allocation4 + $0x1], 0 }
   0x2   :  { %13 = vsyncpa [#allocation5], 0 }
   0x3   :  { %15 = vsyncpa [#allocation5 + $0x1], 0  ;;  %s932_s18 = smov 0   ;;  %s934_s19 = smov 0  }
   0x4   :  { %s936_s20 = smov 0   ;;  %s938_s21 = smov 0  }
   0x5   :  { %s940_s22 = smov 0   ;;  %s942_s23 = smov 0  }
   0x6 LB: > { %s696_s24 = sadd.s32 4294967295, %s896_s23   ;;  %s697_s25 = sadd.s32 4294967294, %s896_s23   ;;  %s896_s23 = sphi %s942_s23, %s21_s23   ;;  %s892_s22 = sphi %s940_s22, %s1103_s22   ;;  %s888_s21 = sphi %s938_s21, %s1102_s21   ;;  %s884_s20 = sphi %s936_s20, %s1101_s20   ;;  %s880_s19 = sphi %s934_s19, %s1100_s19   ;;  %s876_s18 = sphi %s932_s18, %s1099_s18  }
   0x7   : > { %s33_s26 = sadd.s32 1, %s892_s22  ;;  %s42_s27 = sadd.s32 1, %s884_s20 }
   0x8   : > { %p35_p0 = scmp.ge.s32.totalorder %s33_s26, 2  ;;  %p49_p1 = scmp.ne.s32.totalorder %s884_s20, %s880_s19 }
   0x9   : > { %p50_p2 = scmp.eq.s32.totalorder %s896_s23, 0  ;;  %p55_p3 = scmp.ne.s32.totalorder %s880_s19, %s876_s18 }
   0xa   : > { %s1105_s26 = smov (%p35_p0, %s33_s26), 0  ;;  %p56_p5 = scmp.eq.s32.totalorder %s696_s24, 0 }
   0xb   : > { %p973_p4 = por %p50_p2, %p49_p1  ;;  %s37_s29 = ssub.s32 %s892_s22, %s1105_s26 }
   0xc   : > { %p163_p6 = scmp.eq.s32.totalorder %s696_s24, 1  ;;  %p40_p7 = scmp.eq.s32.totalorder %s37_s29, 0 }
   0xd   : > { %p979_p8 = por %p56_p5, %p55_p3  ;;  %p169_p10 = scmp.eq.s32.totalorder %s697_s25, 1 }
   0xe   : > { %p983_p9 = por %p163_p6, %p49_p1  ;;  %p699_p12 = scmp.ge.s32.totalorder %s896_s23, 2 }
   0xf   : > { %s988_s7 = scalar_select %p40_p7, %s884_s20, %s42_s27  }
  0x10   : > { %p990_p11 = por %p169_p10, %p55_p3  ;;  %p723_p13 = scmp.lt.s32.totalorder %s896_s23, 2 }
  0x11   : > { %s201_s9 = sand.u32 1, %s884_s20   ;;  %s710_s11 = sshll.u32 %s892_s22, 7 }
  0x12   : > { %s700_s10 = sshll.u32 %s201_s9, 7  ;;  %s212_s14 = scalar_lea.hbm %s1089_s0, %s710_s11 }
  0x13   : > { %s205_s15 = scalar_lea.vmem [#allocation3], %s700_s10  ;;  %s213_s17 = sshll.u32 %s212_s14, 4  ;;  %s214_s17 = int_to_ptr.hbm [resolvable:$true] %s213_s17 }
  0x14   : > { %s215_s16 = sshll.u32 %s205_s15, 4  ;;  %p716_p0 = pnand %p723_p13, %p973_p4  ;;  %s216_s16 = int_to_ptr.vmem [resolvable:$true] %s215_s16 }
  0x15   : > { %p703_p1 = scmp.ge.s32.totalorder %s896_s23, 1  ;;  %s202_s24 = scalar_lea.sflag [#allocation4], %s201_s9 }
  0x16   : > { %s898_s25 = smov 256   ;;  %s899_s27 = smov 16  }
  0x17   : > { %718 = dma.hbm_to_vmem [thread:$0]  (!%p716_p0), %s214_s17, 2048, %s216_s16, %s202_s24, %s898_s25, %s898_s25, %s899_s27  }
  0x18   : > { %p223_p2 = scmp.lt.s32.totalorder %s896_s23, 3 }
  0x1a   : > { %p224_p3 = pnand %p703_p1, %p223_p2 }
  0x1b   : > { %s1006_s29 = sand.u32 (!%p224_p3), 1, %s880_s19  }
  0x1c   : > { %227 = sbr.rel (%p224_p3) target bundleno = 696 (0x2b8), region = 40  ;;  %s704_s10 = sshll.u32 (!%p224_p3), %s1006_s29, 7 }
  0x1d   : > { %s230_s11 = scalar_lea.sflag (!%p224_p3), [#allocation4], %s1006_s29  ;;  %s233_s12 = scalar_lea.vmem (!%p224_p3), [#allocation3], %s704_s10 }
  0x21   : > { %867 = dma.done.wait (%p979_p8), %s230_s11, 2048  }
  0x22   : > { %869 = vsyncadd (%p979_p8), %s230_s11, 4294965248  ;;  %v268_v0 = vld [vmem:[%s233_s12] sm:$0xff]  ;;  %v269_v1 = vld [vmem:[%s233_s12 + $0x8] sm:$0xff]  ;;  %v900_v24 = vmov 0   ;;  %vm265_vm0 = vcmask 516096   ;;  %vm488_vm1 = vcmask 130112   ;;  %s615_s27 = scalar_lea.hbm %s1094_s5, %s888_s21 }
  0x23   : > { %v284_v2 = vadd.f32 %v269_v1, %v268_v0  ;;  %v272_v3 = vld [vmem:[%s233_s12 + $0x20] sm:$0xff]  ;;  %v273_v4 = vld [vmem:[%s233_s12 + $0x28] sm:$0xff]  ;;  %v270_v8 = vld [vmem:[%s233_s12 + $0x10] sm:$0xff]  ;;  %777 = vset.pattern.permute.xlu2 %v900_v24  ;;  %778 = vset.pattern.permute.xlu0 %v900_v24  ;;  %vm492_vm2 = vcmask 195712   ;;  %vm496_vm3 = vcmask 261312   ;;  %vm500_vm4 = vcmask 326912  }
  0x24   : > { %v290_v5 = vadd.f32 %v273_v4, %v272_v3  ;;  %v276_v6 = vld [vmem:[%s233_s12 + $0x40] sm:$0xff]  ;;  %v277_v7 = vld [vmem:[%s233_s12 + $0x48] sm:$0xff]  ;;  %v271_v9 = vld [vmem:[%s233_s12 + $0x18] sm:$0xff]  ;;  %779 = vset.pattern.permute.xlu1 %v900_v24  ;;  %vm504_vm5 = vcmask 392512   ;;  %vm508_vm6 = vcmask 458112   ;;  %vm512_vm7 = vcmask 523712  }
  0x25   : > { %285 = vadd.xlane.f32.xlu0 %v284_v2  ;;  %v296_v10 = vadd.f32 %v277_v7, %v276_v6  ;;  %v274_v11 = vld [vmem:[%s233_s12 + $0x30] sm:$0xff]  ;;  %v275_v12 = vld [vmem:[%s233_s12 + $0x38] sm:$0xff]  ;;  %v287_v13 = vadd.f32 %v271_v9, %v270_v8  ;;  %v280_v18 = vld [vmem:[%s233_s12 + $0x60] sm:$0xff]  ;;  %vm532_vm8 = vcmask 523264   ;;  %vm563_vm9 = vcmask 1043456   ;;  %s259_s10 = scalar_lea.vmem [#allocation6], %s1006_s29 }
  0x26   : > { %291 = vadd.xlane.f32.xlu1 %v290_v5  ;;  %v278_v14 = vld [vmem:[%s233_s12 + $0x50] sm:$0xff]  ;;  %v279_v15 = vld [vmem:[%s233_s12 + $0x58] sm:$0xff]  ;;  %v293_v16 = vadd.f32 %v275_v12, %v274_v11  ;;  %v281_v19 = vld [vmem:[%s233_s12 + $0x68] sm:$0xff]  ;;  %vm559_vm10 = vcmask 31744   ;;  %s617_s11 = sshll.u32 %s259_s10, 4  ;;  %s607_s21 = scalar_lea.sflag [#allocation5], %s1006_s29  ;;  %s618_s11 = int_to_ptr.vmem [resolvable:$true] %s617_s11 }
  0x27   : > { %297 = vadd.xlane.f32.xlu2 %v296_v10  ;;  %v299_v17 = vadd.f32 %v279_v15, %v278_v14  ;;  %v282_v20 = vld [vmem:[%s233_s12 + $0x70] sm:$0xff]  ;;  %v283_v21 = vld [vmem:[%s233_s12 + $0x78] sm:$0xff]  ;;  %v302_v22 = vadd.f32 %v281_v19, %v280_v18  ;;  %s619_s12 = sshll.u32 %s615_s27, 4  ;;  %s834_s14 = scalar_lea.hbm %s1094_s5, 2  ;;  %s620_s12 = int_to_ptr.hbm [resolvable:$true] %s619_s12 }
  0x28   : > { %v305_v23 = vadd.f32 %v283_v21, %v282_v20  ;;  %s828_s28 = sshra.s32 %s620_s12, 4  ;;  %s829_s28 = int_to_ptr.hbm [resolvable:$true] %s828_s28 }
  0x29   : > { %s830_s30 = scalar_lea.hbm %s829_s28, 1  ;;  %p835_p7 = scmp.lt.s32.totalorder %s829_s28, %s1094_s5 }
  0x2a   : > { %p831_p4 = scmp.ne.s32.totalorder %s829_s28, %s830_s30  ;;  %p836_p8 = scmp.lt.s32.totalorder %s834_s14, %s830_s30 }
  0x2c   : > { %p832_p5 = pnand %p831_p4, %p983_p9  ;;  %p837_p10 = por %p836_p8, %p835_p7 }
  0x2d   : > { %288 = vadd.xlane.f32.xlu0 %v287_v13 }
  0x2e   : > { %294 = vadd.xlane.f32.xlu1 %v293_v16  ;;  %p833_p6 = pneg %p832_p5 }
  0x2f   : > { %300 = vadd.xlane.f32.xlu2 %v299_v17 }
  0x30   : > { %p838_p13 = pnand %p837_p10, %p833_p6 }
  0x35   : > { %303 = vadd.xlane.f32.xlu0 %v302_v22 }
  0x36   : > { %306 = vadd.xlane.f32.xlu1 %v305_v23 }
  0x98   : > { %v286_v25 = vpop.xlane.xlu0 %285 }
  0x99   : > { %v316_v26 = vperm.slane %v286_v25, 0  ;;  %v317_v27 = vperm.slane %v286_v25, 1  ;;  %v318_v28 = vperm.slane %v286_v25, 2  ;;  %v319_v29 = vperm.slane %v286_v25, 3  ;;  %v292_v44 = vpop.xlane.xlu1 %291 }
  0x9a   : > { %v320_v30 = vperm.slane %v286_v25, 4  ;;  %v321_v31 = vperm.slane %v286_v25, 5  ;;  %v322_v32 = vperm.slane %v286_v25, 6  ;;  %v323_v33 = vperm.slane %v286_v25, 7  ;;  %v298_v0 = vpop.xlane.xlu2 %297 }
  0x9b   : > { %380 = vst [vmem:[#allocation1] ss:$9 sm:$0xff] %v316_v26  ;;  %v332_v45 = vperm.slane %v292_v44, 0  ;;  %v333_v46 = vperm.slane %v292_v44, 1  ;;  %v334_v47 = vperm.slane %v292_v44, 2  ;;  %v335_v49 = vperm.slane %v292_v44, 3 }
  0x9c   : > { %382 = vst [vmem:[#allocation1 + $0x1] ss:$9 sm:$0xff] %v317_v27  ;;  %v336_v50 = vperm.slane %v292_v44, 4  ;;  %v337_v51 = vperm.slane %v292_v44, 5  ;;  %v338_v52 = vperm.slane %v292_v44, 6  ;;  %v339_v53 = vperm.slane %v292_v44, 7 }
  0x9d   : > { %384 = vst [vmem:[#allocation1 + $0x2] ss:$9 sm:$0xff] %v318_v28  ;;  %v348_v1 = vperm.slane %v298_v0, 0  ;;  %v349_v2 = vperm.slane %v298_v0, 1  ;;  %v350_v3 = vperm.slane %v298_v0, 2  ;;  %v351_v5 = vperm.slane %v298_v0, 3 }
  0x9e   : > { %386 = vst [vmem:[#allocation1 + $0x3] ss:$9 sm:$0xff] %v319_v29  ;;  %v352_v6 = vperm.slane %v298_v0, 4  ;;  %v353_v7 = vperm.slane %v298_v0, 5  ;;  %v354_v8 = vperm.slane %v298_v0, 6  ;;  %v355_v9 = vperm.slane %v298_v0, 7 }
  0x9f   : > { %388 = vst [vmem:[#allocation1 + $0x4] ss:$9 sm:$0xff] %v320_v30 }
  0xa0   : > { %390 = vst [vmem:[#allocation1 + $0x5] ss:$9 sm:$0xff] %v321_v31  ;;  %v289_v34 = vpop.xlane.xlu0 %288 }
  0xa1   : > { %392 = vst [vmem:[#allocation1 + $0x6] ss:$9 sm:$0xff] %v322_v32  ;;  %v324_v35 = vperm.slane %v289_v34, 0  ;;  %v325_v36 = vperm.slane %v289_v34, 1  ;;  %v326_v37 = vperm.slane %v289_v34, 2  ;;  %v327_v39 = vperm.slane %v289_v34, 3  ;;  %v295_v54 = vpop.xlane.xlu1 %294 }
  0xa2   : > { %394 = vst [vmem:[#allocation1 + $0x7] ss:$9 sm:$0xff] %v323_v33  ;;  %v328_v40 = vperm.slane %v289_v34, 4  ;;  %v329_v41 = vperm.slane %v289_v34, 5  ;;  %v330_v42 = vperm.slane %v289_v34, 6  ;;  %v331_v43 = vperm.slane %v289_v34, 7  ;;  %v301_v10 = vpop.xlane.xlu2 %300 }
  0xa3   : > { %v340_v55 = vperm.slane %v295_v54, 0  ;;  %v341_v56 = vperm.slane %v295_v54, 1  ;;  %v342_v57 = vperm.slane %v295_v54, 2  ;;  %v343_v59 = vperm.slane %v295_v54, 3 }
  0xa4   : > { %v344_v60 = vperm.slane %v295_v54, 4  ;;  %v345_v61 = vperm.slane %v295_v54, 5  ;;  %v346_v62 = vperm.slane %v295_v54, 6  ;;  %v347_v63 = vperm.slane %v295_v54, 7 }
  0xa5   : > { %v356_v11 = vperm.slane %v301_v10, 0  ;;  %v357_v12 = vperm.slane %v301_v10, 1  ;;  %v358_v13 = vperm.slane %v301_v10, 2  ;;  %v359_v15 = vperm.slane %v301_v10, 3 }
  0xa6   : > { %v360_v16 = vperm.slane %v301_v10, 4  ;;  %v361_v17 = vperm.slane %v301_v10, 5  ;;  %v362_v18 = vperm.slane %v301_v10, 6  ;;  %v363_v19 = vperm.slane %v301_v10, 7 }
  0xa8   : > { %v304_v20 = vpop.xlane.xlu0 %303 }
  0xa9   : > { %v395_v38 = vld [vmem:[#allocation1] sm:$0xff]  ;;  %v364_v21 = vperm.slane %v304_v20, 0  ;;  %v365_v22 = vperm.slane %v304_v20, 1  ;;  %v366_v23 = vperm.slane %v304_v20, 2  ;;  %v367_v24 = vperm.slane %v304_v20, 3  ;;  %v307_v30 = vpop.xlane.xlu1 %306 }
  0xaa   : > { %396 = vst [vmem:[#allocation1] ss:$9 sm:$0xff] %v324_v35  ;;  %460 = vperm.xlu2 %777, %v395_v38   ;;  %v368_v26 = vperm.slane %v304_v20, 4  ;;  %v369_v27 = vperm.slane %v304_v20, 5  ;;  %v370_v28 = vperm.slane %v304_v20, 6  ;;  %v371_v29 = vperm.slane %v304_v20, 7 }
  0xab   : > { %397 = vst [vmem:[#allocation1 + $0x1] ss:$9 sm:$0xff] %v325_v36  ;;  %v372_v31 = vperm.slane %v307_v30, 0  ;;  %v373_v32 = vperm.slane %v307_v30, 1  ;;  %v374_v33 = vperm.slane %v307_v30, 2  ;;  %v375_v34 = vperm.slane %v307_v30, 3 }
  0xac   : > { %398 = vst [vmem:[#allocation1 + $0x2] ss:$9 sm:$0xff] %v326_v37  ;;  %v376_v36 = vperm.slane %v307_v30, 4  ;;  %v377_v37 = vperm.slane %v307_v30, 5  ;;  %v378_v38 = vperm.slane %v307_v30, 6 }
  0xad   : > { %399 = vst [vmem:[#allocation1 + $0x3] ss:$9 sm:$0xff] %v327_v39  ;;  %v379_v39 = vperm.slane %v307_v30, 7 }
  0xae   : > { %400 = vst [vmem:[#allocation1 + $0x4] ss:$9 sm:$0xff] %v328_v40 }
  0xaf   : > { %401 = vst [vmem:[#allocation1 + $0x5] ss:$9 sm:$0xff] %v329_v41  ;;  %v901_v41 = vmov 0.0  }
  0xb0   : > { %402 = vst [vmem:[#allocation1 + $0x6] ss:$9 sm:$0xff] %v330_v42  ;;  %v530_v42 = vld [vmem:[%s1090_s1 + $0x38] sm:$0xff] }
  0xb1   : > { %403 = vst [vmem:[#allocation1 + $0x7] ss:$9 sm:$0xff] %v331_v43  ;;  %544 = vmatpush.msra.mxu0 %v530_v42  ;;  %v529_v43 = vld [vmem:[%s1090_s1 + $0x30] sm:$0xff] }
  0xb2   : > { %266 = vst.msk [vmem:[#allocation2] sm:$0x1] %vm265_vm0, %v901_v41 }
  0xb3   : > { %545 = vmatpush.msra.mxu0 %v529_v43 }
  0xb8   : > { %v404_v48 = vld [vmem:[#allocation1] sm:$0xff] }
  0xb9   : > { %405 = vst [vmem:[#allocation1] ss:$9 sm:$0xff] %v332_v45  ;;  %463 = vperm.xlu0 %778, %v404_v48   ;;  %v528_v45 = vld [vmem:[%s1090_s1 + $0x28] sm:$0xff]  ;;  %v525_v48 = vld [vmem:[%s1090_s1 + $0x10] sm:$0xff] }
  0xba   : > { %406 = vst [vmem:[#allocation1 + $0x1] ss:$9 sm:$0xff] %v333_v46  ;;  %546 = vmatpush.msra.mxu0 %v528_v45  ;;  %v527_v46 = vld [vmem:[%s1090_s1 + $0x20] sm:$0xff] }
  0xbb   : > { %407 = vst [vmem:[#allocation1 + $0x2] ss:$9 sm:$0xff] %v334_v47  ;;  %v526_v47 = vld [vmem:[%s1090_s1 + $0x18] sm:$0xff] }
  0xbc   : > { %408 = vst [vmem:[#allocation1 + $0x3] ss:$9 sm:$0xff] %v335_v49  ;;  %547 = vmatpush.msra.mxu0 %v527_v46  ;;  %v483_v49 = vlaneseq }
  0xbd   : > { %409 = vst [vmem:[#allocation1 + $0x4] ss:$9 sm:$0xff] %v336_v50  ;;  %v524_v50 = vld [vmem:[%s1090_s1 + $0x8] sm:$0xff] }
  0xbe   : > { %410 = vst [vmem:[#allocation1 + $0x5] ss:$9 sm:$0xff] %v337_v51  ;;  %548 = vmatpush.msra.mxu0 %v526_v47 }
  0xbf   : > { %411 = vst [vmem:[#allocation1 + $0x6] ss:$9 sm:$0xff] %v338_v52  ;;  %v523_v52 = vld [vmem:[%s1090_s1] sm:$0xff] }
  0xc0   : > { %412 = vst [vmem:[#allocation1 + $0x7] ss:$9 sm:$0xff] %v339_v53  ;;  %549 = vmatpush.msra.mxu0 %v525_v48  ;;  %v484_v53 = vand.u32 127, %v483_v49 }
  0xc2   : > { %550 = vmatpush.msra.mxu0 %v524_v50  ;;  %v486_v54 = vadd.s32 4294967288, %v484_v53  ;;  %v502_v0 = vadd.s32 4294967256, %v484_v53  ;;  %v510_v10 = vadd.s32 4294967240, %v484_v53 }
  0xc4   : > { %551 = vmatpush.msra.mxu0 %v523_v52 }
  0xc7   : > { %v413_v58 = vld [vmem:[#allocation1] sm:$0xff] }
  0xc8   : > { %414 = vst [vmem:[#allocation1] ss:$9 sm:$0xff] %v340_v55  ;;  %466 = vperm.xlu1 %779, %v413_v58  }
  0xc9   : > { %415 = vst [vmem:[#allocation1 + $0x1] ss:$9 sm:$0xff] %v341_v56  ;;  %v490_v56 = vadd.s32 4294967280, %v484_v53 }
  0xca   : > { %416 = vst [vmem:[#allocation1 + $0x2] ss:$9 sm:$0xff] %v342_v57 }
  0xcb   : > { %417 = vst [vmem:[#allocation1 + $0x3] ss:$9 sm:$0xff] %v343_v59 }
  0xcc   : > { %418 = vst [vmem:[#allocation1 + $0x4] ss:$9 sm:$0xff] %v344_v60 }
  0xcd   : > { %419 = vst [vmem:[#allocation1 + $0x5] ss:$9 sm:$0xff] %v345_v61  ;;  %v494_v61 = vadd.s32 4294967272, %v484_v53 }
  0xce   : > { %420 = vst [vmem:[#allocation1 + $0x6] ss:$9 sm:$0xff] %v346_v62 }
  0xcf   : > { %421 = vst [vmem:[#allocation1 + $0x7] ss:$9 sm:$0xff] %v347_v63 }
  0xd6   : > { %v422_v4 = vld [vmem:[#allocation1] sm:$0xff] }
  0xd7   : > { %423 = vst [vmem:[#allocation1] ss:$9 sm:$0xff] %v348_v1  ;;  %469 = vperm.xlu2 %777, %v422_v4   ;;  %v498_v1 = vadd.s32 4294967264, %v484_v53 }
  0xd8   : > { %424 = vst [vmem:[#allocation1 + $0x1] ss:$9 sm:$0xff] %v349_v2 }
  0xd9   : > { %425 = vst [vmem:[#allocation1 + $0x2] ss:$9 sm:$0xff] %v350_v3 }
  0xda   : > { %426 = vst [vmem:[#allocation1 + $0x3] ss:$9 sm:$0xff] %v351_v5 }
  0xdb   : > { %427 = vst [vmem:[#allocation1 + $0x4] ss:$9 sm:$0xff] %v352_v6 }
  0xdc   : > { %428 = vst [vmem:[#allocation1 + $0x5] ss:$9 sm:$0xff] %v353_v7 }
  0xdd   : > { %429 = vst [vmem:[#allocation1 + $0x6] ss:$9 sm:$0xff] %v354_v8  ;;  %v506_v8 = vadd.s32 4294967248, %v484_v53 }
  0xde   : > { %430 = vst [vmem:[#allocation1 + $0x7] ss:$9 sm:$0xff] %v355_v9 }
  0xe5   : > { %v431_v14 = vld [vmem:[#allocation1] sm:$0xff] }
  0xe6   : > { %432 = vst [vmem:[#allocation1] ss:$9 sm:$0xff] %v356_v11  ;;  %472 = vperm.xlu2 %777, %v431_v14  }
  0xe7   : > { %433 = vst [vmem:[#allocation1 + $0x1] ss:$9 sm:$0xff] %v357_v12 }
  0xe8   : > { %434 = vst [vmem:[#allocation1 + $0x2] ss:$9 sm:$0xff] %v358_v13 }
  0xe9   : > { %435 = vst [vmem:[#allocation1 + $0x3] ss:$9 sm:$0xff] %v359_v15  ;;  %v267_v15 = vld [vmem:[#allocation2] sm:$0x1] }
  0xea   : > { %436 = vst [vmem:[#allocation1 + $0x4] ss:$9 sm:$0xff] %v360_v16 }
  0xeb   : > { %437 = vst [vmem:[#allocation1 + $0x5] ss:$9 sm:$0xff] %v361_v17 }
  0xec   : > { %438 = vst [vmem:[#allocation1 + $0x6] ss:$9 sm:$0xff] %v362_v18 }
  0xed   : > { %439 = vst [vmem:[#allocation1 + $0x7] ss:$9 sm:$0xff] %v363_v19 }
  0xf4   : > { %v440_v25 = vld [vmem:[#allocation1] sm:$0xff] }
  0xf5   : > { %475 = vperm.xlu1 %779, %v440_v25   ;;  %441 = vst [vmem:[#allocation1] ss:$9 sm:$0xff] %v364_v21 }
  0xf6   : > { %442 = vst [vmem:[#allocation1 + $0x1] ss:$9 sm:$0xff] %v365_v22  ;;  %v557_v22 = vld [vmem:[%s1092_s3] sm:$0xf] }
  0xf7   : > { %443 = vst [vmem:[#allocation1 + $0x2] ss:$9 sm:$0xff] %v366_v23  ;;  %706 = vmatpush.msk.msra.mxu1 %vm563_vm9, %v557_v22  ;;  %v531_v23 = vld [vmem:[%s1091_s2] sm:$0x1] }
  0xf8   : > { %444 = vst [vmem:[#allocation1 + $0x3] ss:$9 sm:$0xff] %v367_v24 }
  0xf9   : > { %445 = vst [vmem:[#allocation1 + $0x4] ss:$9 sm:$0xff] %v368_v26 }
  0xfa   : > { %446 = vst [vmem:[#allocation1 + $0x5] ss:$9 sm:$0xff] %v369_v27  ;;  %v558_v27 = vld [vmem:[%s1093_s4] sm:$0x1] }
  0xfb   : > { %447 = vst [vmem:[#allocation1 + $0x6] ss:$9 sm:$0xff] %v370_v28 }
  0xfc   : > { %448 = vst [vmem:[#allocation1 + $0x7] ss:$9 sm:$0xff] %v371_v29 }
 0x103   : > { %v449_v35 = vld [vmem:[#allocation1] sm:$0xff] }
 0x104   : > { %478 = vperm.xlu2 %777, %v449_v35   ;;  %450 = vst [vmem:[#allocation1] ss:$9 sm:$0xff] %v372_v31  ;;  %v461_v44 = vpop.permute.xlu2 %460 }
 0x105   : > { %451 = vst [vmem:[#allocation1 + $0x1] ss:$9 sm:$0xff] %v373_v32  ;;  %v485_v60 = vperm.slane %v461_v44, %v484_v53 }
 0x106   : > { %452 = vst [vmem:[#allocation1 + $0x2] ss:$9 sm:$0xff] %v374_v33 }
 0x107   : > { %453 = vst [vmem:[#allocation1 + $0x3] ss:$9 sm:$0xff] %v375_v34 }
 0x108   : > { %454 = vst [vmem:[#allocation1 + $0x4] ss:$9 sm:$0xff] %v376_v36 }
 0x109   : > { %455 = vst [vmem:[#allocation1 + $0x5] ss:$9 sm:$0xff] %v377_v37 }
 0x10a   : > { %456 = vst [vmem:[#allocation1 + $0x6] ss:$9 sm:$0xff] %v378_v38 }
 0x10b   : > { %457 = vst [vmem:[#allocation1 + $0x7] ss:$9 sm:$0xff] %v379_v39 }
 0x112   : > { %v458_v40 = vld [vmem:[#allocation1] sm:$0xff] }
 0x113   : > { %481 = vperm.xlu1 %779, %v458_v40  }
 0x12b   : > { %v464_v55 = vpop.permute.xlu0 %463 }
 0x12c   : > { %v487_v58 = vperm.slane %v464_v55, %v486_v54 }
 0x12e   : > { %v489_v63 = vsel %vm488_vm1, %v487_v58, %v485_v60 }
 0x131   : > { %v470_v51 = vpop.permute.xlu2 %469 }
 0x132   : > { %v495_v4 = vperm.slane %v470_v51, %v494_v61 }
 0x13a   : > { %v467_v57 = vpop.permute.xlu1 %466 }
 0x13b   : > { %v491_v59 = vperm.slane %v467_v57, %v490_v56 }
 0x13d   : > { %v493_v2 = vsel %vm492_vm2, %v491_v59, %v489_v63 }
 0x13e   : > { %v497_v5 = vsel %vm496_vm3, %v495_v4, %v493_v2 }
 0x140   : > { %v473_v62 = vpop.permute.xlu2 %472 }
 0x141   : > { %v499_v7 = vperm.slane %v473_v62, %v498_v1 }
 0x143   : > { %v501_v11 = vsel %vm500_vm4, %v499_v7, %v497_v5 }
 0x15e   : > { %v479_v9 = vpop.permute.xlu2 %478 }
 0x15f   : > { %v507_v13 = vperm.slane %v479_v9, %v506_v8 }
 0x167   : > { %v476_v3 = vpop.permute.xlu1 %475 }
 0x168   : > { %v503_v6 = vperm.slane %v476_v3, %v502_v0 }
 0x16a   : > { %v505_v12 = vsel %vm504_vm5, %v503_v6, %v501_v11 }
 0x16b   : > { %v509_v17 = vsel %vm508_vm6, %v507_v13, %v505_v12 }
 0x185   : > { %v482_v14 = vpop.permute.xlu1 %481 }
 0x186   : > { %v511_v16 = vperm.slane %v482_v14, %v510_v10 }
 0x188   : > { %v513_v18 = vsel %vm512_vm7, %v511_v16, %v509_v17 }
 0x189   : > { %v515_v19 = vadd.f32 %v513_v18, %v267_v15 }
 0x18b   : > { %517 = vst.msk [vmem:[#allocation2] sm:$0x1] %vm265_vm0, %v515_v19 }
 0x192   : > { %v521_v20 = vld [vmem:[#allocation2] sm:$0x1] }
 0x193   : > { %v522_v21 = vmul.f32 0.00390625, %v521_v20 }
 0x195   : > { %705 = vmatmul.msk.f32.vlgmr.msra.gmra.mxu0 %vm532_vm8, %v522_v21 }
 0x212   : > { %v553_v24 = vpop.f32.mrf.mxu0 }
 0x213   : > { %v554_v25 = vadd.f32 %v553_v24, %v531_v23 }
 0x215   : > { %v556_v26 = vmax.f32 %v554_v25, 0.0 }
 0x217   : > { %707 = vmatmul.msk.f32.vlgmr.msra.gmra.mxu1 %vm559_vm10, %v556_v26 }
 0x294   : > { %v584_v28 = vpop.f32.mrf.mxu1 }
 0x295   : > { %v585_v29 = vadd.f32 %v584_v28, %v558_v27 }
 0x297   : > { %v587_v30 = vsub.f32 0.0, %v585_v29 }
 0x299   : > { %v588_v31 = vmul.f32 1.442695, %v587_v30 }
 0x29b   : > { %780 = vpow2.f32 %v588_v31 }
 0x2a1   : > { %v781_v32 = vpop.eup %780 }
 0x2a2   : > { %v590_v33 = vadd.f32 1.0, %v781_v32 }
 0x2a4   : > { %782 = vrcp.f32 %v590_v33  ;;  %v602_v37 = vand.u32 2147483648, %v590_v33  ;;  %v600_v39 = vand.u32 2147483647, %v590_v33  ;;  %vm596_vm12 = vweird.f32 %v590_v33 }
 0x2a6   : > { %v603_v41 = vor.u32 1.1754944e-38, %v602_v37  ;;  %vm601_vm14 = vcmp.eq.f32.partialorder %v600_v39, 8.507059e+37 }
 0x2aa   : > { %v783_v34 = vpop.eup %782 }
 0x2ab   : > { %v592_v35 = vmul.f32 %v783_v34, %v590_v33  ;;  %vm597_vm11 = vweird.f32 %v783_v34 }
 0x2ac   : > { %vm598_vm13 = vmor %vm596_vm12, %vm597_vm11 }
 0x2ad   : > { %v593_v36 = vsub.f32 1.0, %v592_v35 }
 0x2af   : > { %v594_v38 = vmul.f32 %v783_v34, %v593_v36 }
 0x2b1   : > { %v595_v40 = vadd.f32 %v783_v34, %v594_v38 }
 0x2b3   : > { %v599_v42 = vsel %vm598_vm13, %v783_v34, %v595_v40 }
 0x2b4   : > { %v604_v43 = vsel %vm601_vm14, %v603_v41, %v599_v42 }
 0x2b5   : > { %605 = vst.msk [vmem:[%s259_s10] sm:$0x1] %vm265_vm0, %v604_v43 }
 0x2b6   : > { %841 = shalt.err (!%p838_p13)
}
 0x2b7   : > { %713 = dma.vmem_to_hbm [thread:$0]  (%p983_p9), %s618_s11, 16, %s620_s12, %s607_s21  }
 0x2b8 PF: > { %s631_s29 = sand.u32 1, %s876_s18   ;;  %p720_p0 = pnand %p699_p12, %p990_p11 }
 0x2b9   : > { %s632_s17 = scalar_lea.sflag [#allocation5], %s631_s29 }
 0x2ba   : > { %p721_p1 = pneg %p720_p0 }
 0x2bc   : > { %871 = dma.done.wait (%p721_p1), %s632_s17, 16  }
 0x2bd   : > { %873 = vsyncadd (%p721_p1), %s632_s17, 4294967280  ;;  %s21_s23 = sadd.s32 1, %s896_s23   ;;  %s1099_s18 = smov %s880_s19 }
 0x2be   : > { %p18_p2 = scmp.ge.s32.totalorder %s21_s23, 4   ;;  %s1100_s19 = smov %s884_s20 }
 0x2bf   : > { %s1101_s20 = smov %s988_s7  ;;  %s1102_s21 = smov %s892_s22 }
 0x2c0   : > { %s1103_s22 = smov %s1105_s26  ;;  %20 = sbr.rel (!%p18_p2) target bundleno = 6 (0x6), region = 100 }
 0x2c5   :  { %637 = vsyncpa [#allocation4], 1 }
 0x2c6   :  { %639 = vsyncpa [#allocation4 + $0x1], 1 }
 0x2c7   :  { %640 = vsyncpa [#allocation5], 1 }
 0x2c8   :  { %642 = vsyncpa [#allocation5 + $0x1], 1 }

</bundles_post_ra>
